<compile_context>
chip_gen: v5e
topology: v5e:2x2
jax: 0.10.0
libtpu: 0.0.40
codegen_flags: <defaults>
</compile_context>

<pallas_src>
import math
import numpy as np
import jax
import jax.numpy as jnp
from jax.experimental import pallas as pl
from jax.experimental.pallas import tpu as pltpu

# ---- GptNeoxMLP config (small, lane-friendly) ----
B, T = 2, 8
N_EMBD = 32
INTERMEDIATE = 128          # intermediate_size: multiple of 128 -> lane-dense
C_PAD = 128                 # padded proj output width for unmasked stores
M = B * T                   # folded row count (multiple of 8 sublanes)
TM = 8                      # rows per grid step (sublane-aligned)

_SQRT_2_OVER_PI = math.sqrt(2.0 / math.pi)


def _gelu_tanh(x):
    # F.gelu(x, approximate="tanh")  -- computed in f32 (VPU/EUP)
    return 0.5 * x * (1.0 + jnp.tanh(_SQRT_2_OVER_PI * (x + 0.044715 * x * x * x)))


# ------------------------------ Pallas kernel ------------------------------
def gptneox_mlp_kernel(x_ref, wfc_ref, bfc_ref, wproj_ref, bproj_ref, out_ref):
    # bf16 MXU operands, f32 accumulation; bias/GELU in f32.
    x = x_ref[...].astype(jnp.bfloat16)                       # (TM, N_EMBD)
    h = jnp.dot(x, wfc_ref[...],
                preferred_element_type=jnp.float32) + bfc_ref[...]
    g = _gelu_tanh(h)                                          # (TM, INTERMEDIATE) f32
    out = jnp.dot(g.astype(jnp.bfloat16), wproj_ref[...],
                  preferred_element_type=jnp.float32) + bproj_ref[...]
    out_ref[...] = out                                         # (TM, C_PAD) lane-dense


def make_gptneox_mlp_params(w_fc, b_fc, w_proj, b_proj):
    """One-time parameter prep (hoisted out of the per-call path):
    bf16 weight casts + zero-padding of the proj weight/bias to 128 lanes."""
    w_fc_b = w_fc.astype(jnp.bfloat16)                              # (N_EMBD, INTERMEDIATE)
    w_proj_p = (jnp.zeros((INTERMEDIATE, C_PAD), jnp.bfloat16)
                .at[:, :N_EMBD].set(w_proj.astype(jnp.bfloat16)))   # (INTERMEDIATE, C_PAD)
    b_fc_f = b_fc.astype(jnp.float32)                               # (1, INTERMEDIATE)
    b_proj_p = (jnp.zeros((1, C_PAD), jnp.float32)
                .at[:, :N_EMBD].set(b_proj.astype(jnp.float32)))    # (1, C_PAD)
    return w_fc_b, b_fc_f, w_proj_p, b_proj_p


def gptneox_mlp(x, w_fc_b, b_fc_f, w_proj_p, b_proj_p):
    """x: (B, T, N_EMBD) f32. Params already prepped by make_gptneox_mlp_params."""
    x2d = x.reshape(M, N_EMBD)

    grid = (pl.cdiv(M, TM),)
    out_p = pl.pallas_call(
        gptneox_mlp_kernel,
        out_shape=jax.ShapeDtypeStruct((M, C_PAD), jnp.float32),
        grid=grid,
        in_specs=[
            pl.BlockSpec((TM, N_EMBD), lambda i: (i, 0)),            # x rows (tiled)
            pl.BlockSpec((N_EMBD, INTERMEDIATE), lambda i: (0, 0)),  # w_fc (resident)
            pl.BlockSpec((1, INTERMEDIATE), lambda i: (0, 0)),       # b_fc (resident)
            pl.BlockSpec((INTERMEDIATE, C_PAD), lambda i: (0, 0)),   # w_proj padded
            pl.BlockSpec((1, C_PAD), lambda i: (0, 0)),              # b_proj padded
        ],
        out_specs=pl.BlockSpec((TM, C_PAD), lambda i: (i, 0)),
        compiler_params=pltpu.CompilerParams(
            dimension_semantics=("parallel",)),
    )(x2d, w_fc_b, b_fc_f, w_proj_p, b_proj_p)

    # Padded columns are exactly zero; slice them off (a downstream consumer
    # could instead take the padded slab directly).
    return out_p[:, :N_EMBD].reshape(B, T, N_EMBD)


# --------------------------- pure-JAX reference ----------------------------
def reference_mlp(x, w_fc, b_fc, w_proj, b_proj):
    hp = jax.lax.Precision.HIGHEST   # precise reference; no global override
    h = jnp.einsum("btc,ch->bth", x, w_fc, precision=hp) + b_fc[0]
    g = _gelu_tanh(h)
    return jnp.einsum("bth,hc->btc", g, w_proj, precision=hp) + b_proj[0]


# ------------------------------- setup / run -------------------------------
if __name__ == "__main__":
    key = jax.random.PRNGKey(0)
    k1, k2, k3, k4, k5 = jax.random.split(key, 5)
    std = 0.02
    w_fc = std * jax.random.normal(k1, (N_EMBD, INTERMEDIATE), jnp.float32)
    b_fc = std * jax.random.normal(k2, (1, INTERMEDIATE), jnp.float32)
    w_proj = std * jax.random.normal(k3, (INTERMEDIATE, N_EMBD), jnp.float32)
    b_proj = std * jax.random.normal(k4, (1, N_EMBD), jnp.float32)
    x = jax.random.normal(k5, (B, T, N_EMBD), jnp.float32)

    # One-time parameter prep (not on the per-call hot path).
    params = jax.block_until_ready(
        make_gptneox_mlp_params(w_fc, b_fc, w_proj, b_proj))

    out = jax.block_until_ready(gptneox_mlp(x, *params))
    ref = jax.block_until_ready(reference_mlp(x, w_fc, b_fc, w_proj, b_proj))

    # bf16 MXU operands with f32 accumulation vs. f32 'highest' reference.
    np.testing.assert_allclose(np.asarray(out), np.asarray(ref),
                               rtol=2e-2, atol=1e-3)
    print("KERNEL_OK")
</pallas_src>

<mosaic_0001>
module attributes {stable_mosaic.version = 11 : i64} {
  func.func @gptneox_mlp_kernel(%arg0: i32, %arg1: memref<8x32xf32, #tpu.memory_space<vmem>>, %arg2: memref<32x128xbf16, #tpu.memory_space<vmem>>, %arg3: memref<1x128xf32, #tpu.memory_space<vmem>>, %arg4: memref<128x128xbf16, #tpu.memory_space<vmem>>, %arg5: memref<1x128xf32, #tpu.memory_space<vmem>>, %arg6: memref<8x128xf32, #tpu.memory_space<vmem>>) attributes {dimension_semantics = [#tpu.dimension_semantics<parallel>], iteration_bounds = array<i64: 2>, scalar_prefetch = 0 : i64, scratch_operands = 0 : i64, tpu.core_type = #tpu.core_type<tc>, window_params = [{transform_indices = @transform_0, window_bounds = array<i64: 8, 32>}, {pipeline_mode = #tpu.pipeline_mode<synchronous>, transform_indices = @transform_1, window_bounds = array<i64: 32, 128>}, {pipeline_mode = #tpu.pipeline_mode<synchronous>, transform_indices = @transform_2, window_bounds = array<i64: 1, 128>}, {pipeline_mode = #tpu.pipeline_mode<synchronous>, transform_indices = @transform_3, window_bounds = array<i64: 128, 128>}, {pipeline_mode = #tpu.pipeline_mode<synchronous>, transform_indices = @transform_4, window_bounds = array<i64: 1, 128>}, {transform_indices = @transform_5, window_bounds = array<i64: 8, 128>}]} {
    %c0 = arith.constant 0 : index
    %c0_0 = arith.constant 0 : index
    %0 = vector.load %arg1[%c0, %c0_0] : memref<8x32xf32, #tpu.memory_space<vmem>>, vector<8x32xf32>
    %1 = arith.truncf %0 : vector<8x32xf32> to vector<8x32xbf16>
    %c0_1 = arith.constant 0 : index
    %c0_2 = arith.constant 0 : index
    %2 = vector.load %arg2[%c0_1, %c0_2] : memref<32x128xbf16, #tpu.memory_space<vmem>>, vector<32x128xbf16>
    %cst = arith.constant dense<0.000000e+00> : vector<8x128xf32>
    %3 = tpu.matmul %1, %2, %cst {dimension_numbers = #tpu.dot_dimension_numbers<[1], [0], [0], [1], [0, 0, 1, 1], [], []>} : vector<8x32xbf16>, vector<32x128xbf16>, vector<8x128xf32> -> vector<8x128xf32>
    %c0_3 = arith.constant 0 : index
    %c0_4 = arith.constant 0 : index
    %4 = vector.load %arg3[%c0_3, %c0_4] : memref<1x128xf32, #tpu.memory_space<vmem>>, vector<1x128xf32>
    %5 = vector.broadcast %4 : vector<1x128xf32> to vector<8x128xf32>
    %6 = arith.addf %3, %5 : vector<8x128xf32>
    %cst_5 = arith.constant 5.000000e-01 : f32
    %7 = vector.broadcast %cst_5 : f32 to vector<8x128xf32>
    %8 = arith.mulf %7, %6 : vector<8x128xf32>
    %cst_6 = arith.constant 4.471500e-02 : f32
    %9 = vector.broadcast %cst_6 : f32 to vector<8x128xf32>
    %10 = arith.mulf %9, %6 : vector<8x128xf32>
    %11 = arith.mulf %10, %6 : vector<8x128xf32>
    %12 = arith.mulf %11, %6 : vector<8x128xf32>
    %13 = arith.addf %6, %12 : vector<8x128xf32>
    %cst_7 = arith.constant 0.797884583 : f32
    %14 = vector.broadcast %cst_7 : f32 to vector<8x128xf32>
    %15 = arith.mulf %14, %13 : vector<8x128xf32>
    %16 = math.tanh %15 : vector<8x128xf32>
    %cst_8 = arith.constant 1.000000e+00 : f32
    %17 = vector.broadcast %cst_8 : f32 to vector<8x128xf32>
    %18 = arith.addf %17, %16 : vector<8x128xf32>
    %19 = arith.mulf %8, %18 : vector<8x128xf32>
    %20 = arith.truncf %19 : vector<8x128xf32> to vector<8x128xbf16>
    %c0_9 = arith.constant 0 : index
    %c0_10 = arith.constant 0 : index
    %21 = vector.load %arg4[%c0_9, %c0_10] : memref<128x128xbf16, #tpu.memory_space<vmem>>, vector<128x128xbf16>
    %cst_11 = arith.constant dense<0.000000e+00> : vector<8x128xf32>
    %22 = tpu.matmul %20, %21, %cst_11 {dimension_numbers = #tpu.dot_dimension_numbers<[1], [0], [0], [1], [0, 0, 1, 1], [], []>} : vector<8x128xbf16>, vector<128x128xbf16>, vector<8x128xf32> -> vector<8x128xf32>
    %c0_12 = arith.constant 0 : index
    %c0_13 = arith.constant 0 : index
    %23 = vector.load %arg5[%c0_12, %c0_13] : memref<1x128xf32, #tpu.memory_space<vmem>>, vector<1x128xf32>
    %24 = vector.broadcast %23 : vector<1x128xf32> to vector<8x128xf32>
    %25 = arith.addf %22, %24 : vector<8x128xf32>
    %c0_14 = arith.constant 0 : index
    %c0_15 = arith.constant 0 : index
    %26 = vector.load %arg6[%c0_14, %c0_15] : memref<8x128xf32, #tpu.memory_space<vmem>>, vector<8x128xf32>
    tpu.vector_store %arg6[%c0_14, %c0_15], %25 {strides = array<i32>} : memref<8x128xf32, #tpu.memory_space<vmem>>, vector<8x128xf32>,
    return
  }
  func.func @transform_0(%arg0: i32) -> (i32, i32) {
    %c0_i32 = arith.constant 0 : i32
    %c0_i32_0 = arith.constant 0 : i32
    return %arg0, %c0_i32 : i32, i32
  }
  func.func @transform_1(%arg0: i32) -> (i32, i32) {
    %c0_i32 = arith.constant 0 : i32
    %c0_i32_0 = arith.constant 0 : i32
    %c0_i32_1 = arith.constant 0 : i32
    return %c0_i32, %c0_i32_0 : i32, i32
  }
  func.func @transform_2(%arg0: i32) -> (i32, i32) {
    %c0_i32 = arith.constant 0 : i32
    %c0_i32_0 = arith.constant 0 : i32
    %c0_i32_1 = arith.constant 0 : i32
    return %c0_i32, %c0_i32_0 : i32, i32
  }
  func.func @transform_3(%arg0: i32) -> (i32, i32) {
    %c0_i32 = arith.constant 0 : i32
    %c0_i32_0 = arith.constant 0 : i32
    %c0_i32_1 = arith.constant 0 : i32
    return %c0_i32, %c0_i32_0 : i32, i32
  }
  func.func @transform_4(%arg0: i32) -> (i32, i32) {
    %c0_i32 = arith.constant 0 : i32
    %c0_i32_0 = arith.constant 0 : i32
    %c0_i32_1 = arith.constant 0 : i32
    return %c0_i32, %c0_i32_0 : i32, i32
  }
  func.func @transform_5(%arg0: i32) -> (i32, i32) {
    %c0_i32 = arith.constant 0 : i32
    %c0_i32_0 = arith.constant 0 : i32
    return %arg0, %c0_i32 : i32, i32
  }
}

</mosaic_0001>

<bundles_post_ra>
// kernel: tpu_custom_call.1
= control target key start
LH: loop header
LB: loop body
LE: loop exit
PB: predicated region body
PF: predicated region fallthrough
CT: control target
= control target key end

     0   :  { %10 = vsyncpa [#allocation3], 0  ;;  %s1003_s0 = inlined_call_operand.hbm [shape: f32[16,32], index: 0, kind: input, shape index: {}]   ;;  %s1004_s1 = inlined_call_operand.hbm [shape: bf16[32,128], index: 1, kind: input, shape index: {}]   ;;  %s1005_s2 = inlined_call_operand.vmem [shape: f32[1,128], index: 2, kind: input, shape index: {}]   ;;  %s1006_s3 = inlined_call_operand.hbm [shape: bf16[128,128], index: 3, kind: input, shape index: {}]   ;;  %s1007_s4 = inlined_call_operand.vmem [shape: f32[1,128], index: 4, kind: input, shape index: {}]   ;;  %s1008_s5 = inlined_call_operand.hbm [shape: f32[16,128], index: 5, kind: output, shape index: {}]  }
   0x1   :  { %12 = vsyncpa [#allocation3 + $0x1], 0 }
   0x2   :  { %13 = vsyncpa [#allocation6], 0 }
   0x3   :  { %14 = vsyncpa [#allocation4], 0 }
   0x4   :  { %16 = vsyncpa [#allocation4 + $0x1], 0  ;;  %s848_s18 = smov 0   ;;  %s850_s19 = smov 0  }
   0x5   :  { %s852_s20 = smov 0   ;;  %s854_s21 = smov 0  }
   0x6 LB: > { %s174_s24 = sshll.u32 %s1004_s1, 4  ;;  %s872_s25 = sadd.s32 4294967295, %s812_s21   ;;  %s812_s21 = sphi %s854_s21, %s1019_s21   ;;  %s808_s20 = sphi %s852_s20, %s1018_s20   ;;  %s804_s19 = sphi %s850_s19, %s1017_s19   ;;  %s800_s18 = sphi %s848_s18, %s1016_s18   ;;  %s175_s24 = int_to_ptr.hbm [resolvable:$true] %s174_s24 }
   0x7   : > { %p513_p0 = scmp.ge.s32.totalorder %s812_s21, 1  ;;  %p43_p1 = scmp.eq.s32.totalorder %s872_s25, 0 }
   0x8   : > { %p163_p2 = scmp.lt.s32.totalorder %s812_s21, 3  ;;  %s814_s27 = smov [#allocation5]  }
   0x9   : > { %s176_s28 = sshll.u32 %s814_s27, 4  ;;  %s191_s6 = sshll.u32 %s1006_s3, 4  ;;  %s177_s28 = int_to_ptr.vmem [resolvable:$true] %s176_s28  ;;  %s192_s6 = int_to_ptr.hbm [resolvable:$true] %s191_s6 }
   0xa   : > { %p877_p3 = pnand %p513_p0, %p163_p2  ;;  %s815_s7 = smov [#allocation7]  }
   0xb   : > { %s193_s8 = sshll.u32 %s815_s7, 4  ;;  %s816_s9 = smov 64   ;;  %s194_s8 = int_to_ptr.vmem [resolvable:$true] %s193_s8 }
   0xc   : > { %p591_p4 = pneg %p877_p3  ;;  %s817_s10 = smov 4  }
   0xd   : > { %s512_s11 = sadd.s32 4294967294, %s812_s21   ;;  %s891_s12 = sadd.s32 1, %s812_s21  }
   0xe   : > { %p592_p6 = pnand %p591_p4, %p43_p1  ;;  %s26_s13 = ssub.s32 %s812_s21, %s891_s12 }
   0xf   : > { %s29_s14 = sadd.s32 1, %s808_s20  ;;  %p27_p7 = scmp.eq.s32.totalorder %s26_s13, 0 }
  0x10   : > { %594 = dma.hbm_to_vmem [thread:$0]  (!%p592_p6), %s175_s24, 256, %s177_s28, [#allocation6], %s816_s9, %s816_s9, %s817_s10  }
  0x11   : > { %597 = dma.hbm_to_vmem [thread:$0]  (!%p592_p6), %s192_s6, 1024, %s194_s8, [#allocation6], %s816_s9, %s816_s9, %s817_s10  }
  0x12   : > { %p36_p8 = scmp.ne.s32.totalorder %s808_s20, %s804_s19  ;;  %p37_p9 = scmp.eq.s32.totalorder %s812_s21, 0 }
  0x13   : > { %p42_p10 = scmp.ne.s32.totalorder %s804_s19, %s800_s18  ;;  %p150_p13 = scmp.eq.s32.totalorder %s872_s25, 1 }
  0x14   : > { %s902_s15 = scalar_select %p27_p7, %s808_s20, %s29_s14  }
  0x15   : > { %p904_p11 = por %p37_p9, %p36_p8  ;;  %p910_p12 = por %p43_p1, %p42_p10 }
  0x16   : > { %p156_p0 = scmp.eq.s32.totalorder %s512_s11, 1  ;;  %p608_p2 = scmp.lt.s32.totalorder %s812_s21, 2 }
  0x17   : > { %s210_s22 = sand.u32 1, %s808_s20   ;;  %p917_p4 = por %p150_p13, %p36_p8 }
  0x18   : > { %p921_p6 = por %p156_p0, %p42_p10  ;;  %s517_s27 = sshll.u32 %s210_s22, 3 }
  0x19   : > { %s518_s28 = sshll.u32 %s812_s21, 3  ;;  %s214_s7 = scalar_lea.vmem [#allocation2], %s517_s27 }
  0x1a   : > { %s218_s6 = scalar_lea.hbm %s1003_s0, %s518_s28  ;;  %s222_s8 = sshll.u32 %s214_s7, 4  ;;  %s223_s8 = int_to_ptr.vmem [resolvable:$true] %s222_s8 }
  0x1b   : > { %s220_s9 = sshll.u32 %s218_s6, 4  ;;  %p931_p7 = pnand %p608_p2, %p904_p11  ;;  %s221_s9 = int_to_ptr.hbm [resolvable:$true] %s220_s9 }
  0x1c   : > { %s211_s11 = scalar_lea.sflag [#allocation3], %s210_s22  ;;  %s712_s13 = sshra.s32 %s221_s9, 4  ;;  %s713_s13 = int_to_ptr.hbm [resolvable:$true] %s712_s13 }
  0x1d   : > { %s714_s14 = scalar_lea.hbm %s713_s13, 8  ;;  %p716_p9 = pneg %p931_p7 }
  0x1e   : > { %p715_p8 = scmp.ne.s32.totalorder %s713_s13, %s714_s14  ;;  %s719_s29 = scalar_lea.hbm %s1003_s0, 16 }
  0x1f   : > { %p720_p11 = scmp.lt.s32.totalorder %s713_s13, %s1003_s0  ;;  %p721_p0 = scmp.lt.s32.totalorder %s719_s29, %s714_s14 }
  0x20   : > { %p717_p10 = pnand %p716_p9, %p715_p8 }
  0x21   : > { %p722_p2 = por %p721_p0, %p720_p11 }
  0x22   : > { %p718_p13 = pneg %p717_p10 }
  0x24   : > { %p723_p5 = pnand %p722_p2, %p718_p13 }
  0x26   : > { %726 = shalt.err (!%p723_p5)
}
  0x27   : > { %601 = dma.hbm_to_vmem [thread:$0]  (!%p931_p7), %s221_s9, 128, %s223_s8, %s211_s11  }
  0x28   : > { %231 = sbr.rel (%p877_p3) target bundleno = 341 (0x155), region = 40  ;;  %s948_s22 = sand.u32 (!%p877_p3), 1, %s804_s19  }
  0x29   : > { %s520_s6 = sshll.u32 (!%p877_p3), %s948_s22, 3  ;;  %s234_s7 = scalar_lea.sflag (!%p877_p3), [#allocation3], %s948_s22 }
  0x2a   : > { %s237_s13 = scalar_lea.vmem (!%p877_p3), [#allocation2], %s520_s6 }
  0x2d   : > { %787 = dma.done.wait (%p910_p12), %s234_s7, 128  }
  0x2e   : > { %789 = vsyncadd (%p910_p12), %s234_s7, 4294967168 }
  0x2f   : > { %791 = dma.done.wait (%p43_p1), [#allocation6], 1280  }
  0x30   : > { %793 = vsyncadd (%p43_p1), [#allocation6], 4294966016  ;;  %v570_v0 = vld [vmem:[#allocation5 + $0x8] sm:$0xff]  ;;  %v569_v2 = vld [vmem:[#allocation5] sm:$0xff]  ;;  %vm298_vm0 = vcmask 261120   ;;  %s566_s8 = sshll.u32 %s872_s25, 3 }
  0x31   : > { %v578_v1 = vld [vmem:[#allocation7 + $0x38] sm:$0xff]  ;;  %308 = vmatpush.bf16.msra.mxu0 %v570_v0  ;;  %v276_v3 = vld [vmem:[%s237_s13] sm:$0xff]  ;;  %v577_v4 = vld [vmem:[#allocation7 + $0x30] sm:$0xff]  ;;  %s418_s11 = scalar_lea.hbm %s1008_s5, %s566_s8  ;;  %s274_s28 = scalar_lea.vmem [#allocation8], %s520_s6 }
  0x32   : > { %393 = vmatpush.bf16.msra.mxu1 %v578_v1  ;;  %v277_v5 = vpack.c.bf16 %v276_v3, %v276_v3  ;;  %v576_v6 = vld [vmem:[#allocation7 + $0x28] sm:$0xff]  ;;  %v575_v7 = vld [vmem:[#allocation7 + $0x20] sm:$0xff]  ;;  %v574_v8 = vld [vmem:[#allocation7 + $0x18] sm:$0xff]  ;;  %s420_s29 = sshll.u32 %s274_s28, 4  ;;  %s422_s30 = sshll.u32 %s418_s11, 4  ;;  %s421_s29 = int_to_ptr.vmem [resolvable:$true] %s420_s29  ;;  %s423_s30 = int_to_ptr.hbm [resolvable:$true] %s422_s30 }
  0x33   : > { %v573_v9 = vld [vmem:[#allocation7 + $0x10] sm:$0xff]  ;;  %v572_v10 = vld [vmem:[#allocation7 + $0x8] sm:$0xff]  ;;  %v571_v11 = vld [vmem:[#allocation7] sm:$0xff]  ;;  %s408_s16 = scalar_lea.sflag [#allocation4], %s948_s22  ;;  %s756_s25 = sshra.s32 %s423_s30, 4  ;;  %s757_s25 = int_to_ptr.hbm [resolvable:$true] %s756_s25 }
  0x34   : > { %v648_v12 = vld [vmem:[%s1005_s2] ss:$0 sm:$0xff]  ;;  %s758_s7 = scalar_lea.hbm %s757_s25, 8  ;;  %s762_s17 = scalar_lea.hbm %s1008_s5, 16 }
  0x35   : > { %309 = vmatpush.bf16.msra.mxu0 %v569_v2  ;;  %v649_v26 = vld [vmem:[%s1007_s4] ss:$0 sm:$0xff]  ;;  %p759_p1 = scmp.ne.s32.totalorder %s757_s25, %s758_s7  ;;  %p763_p12 = scmp.lt.s32.totalorder %s757_s25, %s1008_s5 }
  0x36   : > { %394 = vmatpush.bf16.msra.mxu1 %v577_v4  ;;  %p764_p7 = scmp.lt.s32.totalorder %s762_s17, %s758_s7 }
  0x37   : > { %p760_p3 = pnand %p759_p1, %p917_p4 }
  0x38   : > { %532 = vmatmul.msk.bf16.vlgmr.msra.gmra.mxu0 %vm298_vm0, %v277_v5  ;;  %p765_p8 = por %p764_p7, %p763_p12 }
  0x39   : > { %p761_p5 = pneg %p760_p3 }
  0x3a   : > { %395 = vmatpush.bf16.msra.mxu1 %v576_v6 }
  0x3b   : > { %p766_p9 = pnand %p765_p8, %p761_p5 }
  0x3e   : > { %396 = vmatpush.bf16.msra.mxu1 %v575_v7 }
  0x42   : > { %397 = vmatpush.bf16.msra.mxu1 %v574_v8 }
  0x46   : > { %398 = vmatpush.bf16.msra.mxu1 %v573_v9 }
  0x4a   : > { %399 = vmatpush.bf16.msra.mxu1 %v572_v10 }
  0x4e   : > { %400 = vmatpush.bf16.msra.mxu1 %v571_v11 }
  0xb5   : > { %v311_v13 = vpop.f32.mrf.mxu0 }
  0xb6   : > { %v312_v14 = vadd.f32 %v648_v12, %v311_v13 }
  0xb8   : > { %v316_v15 = vmul.f32 0.044715, %v312_v14  ;;  %v315_v22 = vmul.f32 0.5, %v312_v14 }
  0xba   : > { %v317_v16 = vmul.f32 %v316_v15, %v312_v14 }
  0xbc   : > { %v318_v17 = vmul.f32 %v317_v16, %v312_v14 }
  0xbd   : > { %v313_v18 = vpop.f32.mrf.mxu0 }
  0xbe   : > { %v319_v19 = vadd.f32 %v318_v17, %v312_v14 }
  0xc0   : > { %v320_v20 = vmul.f32 0.7978846, %v319_v19 }
  0xc2   : > { %650 = vtanh.f32 %v320_v20 }
  0xc8   : > { %v651_v21 = vpop.eup %650 }
  0xc9   : > { %v322_v23 = vadd.f32 1.0, %v651_v21 }
  0xcb   : > { %v323_v24 = vmul.f32 %v322_v23, %v315_v22 }
  0xcd   : > { %v324_v25 = vpack.c.bf16 %v323_v24, %v323_v24 }
  0xcf   : > { %401 = vmatmul.bf16.vlgmr.msra.gmra.mxu1 %v324_v25 }
 0x14c   : > { %v402_v27 = vpop.f32.mrf.mxu1 }
 0x14d   : > { %v403_v28 = vadd.f32 %v649_v26, %v402_v27 }
 0x14f   : > { %406 = vst [vmem:[%s274_s28] sm:$0xff] %v403_v28 }
 0x150   : > { %769 = shalt.err (!%p766_p9)
}
 0x151   : > { %589 = dma.vmem_to_hbm [thread:$0]  (%p917_p4), %s421_s29, 128, %s423_s30, %s408_s16  }
 0x154   : > { %v404_v29 = vpop.f32.mrf.mxu1 }
 0x155 PF: > { %s434_s22 = sand.u32 1, %s800_s18   ;;  %p1015_p10 = scmp.ge.s32.totalorder %s812_s21, 2 }
 0x156   : > { %s435_s9 = scalar_lea.sflag [#allocation4], %s434_s22 }
 0x157   : > { %p603_p13 = pnand %p1015_p10, %p921_p6 }
 0x159   : > { %p604_p11 = pneg %p603_p13 }
 0x15b   : > { %795 = dma.done.wait (%p604_p11), %s435_s9, 128  }
 0x15c   : > { %797 = vsyncadd (%p604_p11), %s435_s9, 4294967168  ;;  %p19_p0 = scmp.ge.s32.totalorder %s891_s12, 4   ;;  %s1016_s18 = smov %s804_s19 }
 0x15d   : > { %s1017_s19 = smov %s808_s20  ;;  %s1018_s20 = smov %s902_s15 }
 0x15e   : > { %s1019_s21 = smov %s891_s12  ;;  %21 = sbr.rel (!%p19_p0) target bundleno = 6 (0x6), region = 93 }
 0x163   :  { %441 = vsyncpa [#allocation3], 1 }
 0x164   :  { %443 = vsyncpa [#allocation3 + $0x1], 1 }
 0x165   :  { %444 = vsyncpa [#allocation6], 1 }
 0x166   :  { %445 = vsyncpa [#allocation4], 1 }
 0x167   :  { %447 = vsyncpa [#allocation4 + $0x1], 1 }

</bundles_post_ra>
